<compile_context>
chip_gen: v7x
topology: tpu7x:2x2x1
jax: 0.10.0
libtpu: 0.0.40
codegen_flags: <defaults>
</compile_context>

<pallas_src>
import jax
import jax.numpy as jnp
from jax.experimental import pallas as pl
from jax.experimental.pallas import tpu as pltpu


def _round_up(a, b):
    return ((a + b - 1) // b) * b


def _leaky_relu(x, negative_slope=0.01):
    # torch.nn.LeakyReLU() default; max form = 2 VPU ops.
    return jnp.maximum(x, negative_slope * x)


# ----------------------------------------------------------------------------- kernel


def graph_aggregator_kernel(x_ref,
                            w1g_ref, b1g_ref,   # fused [mlp | mlp_gate]: (Cin, 2*Cp)
                            w2_ref, b2_ref,     # mlp_final[0]: (Cp, Chid)
                            w3_ref, b3_ref,     # mlp_final[2]: (Chid, Cout)
                            out_ref):
    cp = w1g_ref.shape[-1] // 2                 # lane-aligned split point (multiple of 128)

    x = x_ref[...].astype(jnp.bfloat16)         # bf16 MXU operands, f32 accumulate

    # One fused GEMM for both the state and gate projections.
    sg = jnp.dot(x, w1g_ref[...], preferred_element_type=jnp.float32)
    sg = sg + b1g_ref[...]                      # (bn, 2*Cp), f32

    # states = LeakyReLU(x @ W1 + b1); padded lanes are exactly 0.
    states = _leaky_relu(sg[:, :cp])

    # gates = softmax(x @ Wg + bg) over the feature (lane) axis; padded lanes
    # carry a -1e30 bias so exp() -> 0 and they don't perturb the sum.
    g = sg[:, cp:]
    g = g - jnp.max(g, axis=1, keepdims=True)
    g = jnp.exp(g)
    g = g * pl.reciprocal(jnp.sum(g, axis=1, keepdims=True), approx=True)

    s = (states * g).astype(jnp.bfloat16)       # gated states, (bn, Cp)

    # mlp_final: Linear(Cout -> Chid) + LeakyReLU + Linear(Chid -> Cout)
    h = jnp.dot(s, w2_ref[...], preferred_element_type=jnp.float32) + b2_ref[...]
    h = _leaky_relu(h).astype(jnp.bfloat16)
    out = jnp.dot(h, w3_ref[...], preferred_element_type=jnp.float32) + b3_ref[...]

    out_ref[...] = out.astype(out_ref.dtype)


# ----------------------------------------------------------------------------- wrapper


def _vmem_budget_bytes():
    """Generation-aware VMEM budget: ~48 MiB on v7x (64 MiB phys), ~96 MiB on v5e/v6e."""
    try:
        cap = int(pltpu.get_tpu_info().vmem_capacity_bytes)
    except Exception:
        cap = 64 * 1024 * 1024  # conservative fallback, safe on every generation
    return int(min(cap * 3 // 4, 100 * 1024 * 1024))


def _select_block_rows(n, cin, cout, cout_pad, chid, weight_bytes, vmem_limit, block_cap):
    """Largest row tile that fits the VMEM budget, keeping >= ~4 grid steps when possible."""
    per_row = (2 * cin * 4 + 2 * cout * 4   # double-buffered x / out blocks (f32)
               + cin * 2                    # bf16 copy of x
               + 4 * cout_pad * 4           # sg + states/gates temporaries (f32)
               + cout_pad * 2               # bf16 gated states
               + chid * 6                   # h in f32 + bf16
               + cout * 4)                  # f32 result before store
    headroom = 2 * 1024 * 1024              # compiler internal scratch
    avail = max(vmem_limit - weight_bytes - headroom, 8 * per_row)
    bn = (avail // per_row) // 8 * 8
    bn = max(8, min(bn, block_cap))
    # Keep >= ~4 grid steps when there's enough work (megacore sharding on v7x +
    # DMA pipelining), but never below one (8, lanes) tile.
    bn = min(bn, max(8, _round_up(pl.cdiv(n, 4), 8)))
    bn = min(bn, _round_up(n, 8))
    return int(bn)


def prepare_params(params):
    """One-time weight prep: fuse mlp|mlp_gate, lane-align the split, cast to bf16."""
    cin, cout = params["w1"].shape
    chid = params["w2"].shape[1]
    cp = _round_up(cout, 128)                 # 128-lane-aligned split point

    def pad_cols(a, width, fill=0.0):
        return jnp.pad(a, ((0, 0), (0, width - a.shape[1])), constant_values=fill)

    w1p = pad_cols(params["w1"], cp)          # padded state weights -> 0
    b1p = pad_cols(params["b1"], cp)          # padded state bias    -> 0
    wgp = pad_cols(params["wg"], cp)          # padded gate weights  -> 0
    bgp = pad_cols(params["bg"], cp, fill=-1e30)  # padded gate bias -> exp() == 0

    w1g = jnp.concatenate([w1p, wgp], axis=1).astype(jnp.bfloat16)   # (Cin, 2*Cp)
    b1g = jnp.concatenate([b1p, bgp], axis=1).astype(jnp.float32)    # (1,   2*Cp)
    w2 = jnp.pad(params["w2"], ((0, cp - cout), (0, 0))).astype(jnp.bfloat16)  # (Cp, Chid)
    b2 = params["b2"].astype(jnp.float32)
    w3 = params["w3"].astype(jnp.bfloat16)                           # (Chid, Cout)
    b3 = params["b3"].astype(jnp.float32)
    return dict(w1g=w1g, b1g=b1g, w2=w2, b2=b2, w3=w3, b3=b3)


def graph_aggregator(x, prepared, *, block_n=None):
    """x: (N, in_channels) float32 (bf16 accepted: halves the dominant HBM read).
    prepared: output of prepare_params()."""
    n, cin = x.shape
    w1g, b1g = prepared["w1g"], prepared["b1g"]
    w2, b2 = prepared["w2"], prepared["b2"]
    w3, b3 = prepared["w3"], prepared["b3"]
    assert w1g.shape[0] == cin
    cout_pad = w1g.shape[1] // 2
    chid = w2.shape[1]
    cout = w3.shape[1]

    # Single-buffered resident-weight footprint estimate.
    weight_bytes = (cin * 2 * cout_pad * 2 + 2 * cout_pad * 4
                    + cout_pad * chid * 2 + chid * 4
                    + chid * cout * 2 + cout * 4)

    vmem_limit = _vmem_budget_bytes()
    block_cap = block_n if block_n is not None else 8192
    bn = _select_block_rows(n, cin, cout, cout_pad, chid, weight_bytes, vmem_limit, block_cap)
    grid = (pl.cdiv(n, bn),)

    # Advisory cost estimate (no pad/slice copies anymore).
    flops = 2 * n * (cin * 2 * cout_pad + cout_pad * chid + chid * cout)
    transcendentals = n * (cout_pad + 1)
    bytes_accessed = n * cin * x.dtype.itemsize + n * cout * 4 + weight_bytes
    cost = pl.CostEstimate(flops=flops, transcendentals=transcendentals,
                           bytes_accessed=bytes_accessed)

    def build(single_buffer_weights):
        if single_buffer_weights:
            resident = lambda shape: pl.BlockSpec(shape, lambda i: (0, 0),
                                                  pipeline_mode=pl.Buffered(1))
        else:
            resident = lambda shape: pl.BlockSpec(shape, lambda i: (0, 0))
        return pl.pallas_call(
            graph_aggregator_kernel,
            out_shape=jax.ShapeDtypeStruct((n, cout), jnp.float32),
            grid=grid,
            in_specs=[
                pl.BlockSpec((bn, cin), lambda i: (i, 0)),       # x row block
                resident((cin, 2 * cout_pad)), resident((1, 2 * cout_pad)),
                resident((cout_pad, chid)),    resident((1, chid)),
                resident((chid, cout)),        resident((1, cout)),
            ],
            out_specs=pl.BlockSpec((bn, cout), lambda i: (i, 0)),
            compiler_params=pltpu.CompilerParams(
                dimension_semantics=("parallel",),               # shard row blocks on v7x TCs
                vmem_limit_bytes=vmem_limit,
            ),
            cost_estimate=cost,
        )

    try:
        return build(True)(x, w1g, b1g, w2, b2, w3, b3)
    except Exception:
        # pl.Buffered(1) single-buffering not supported on this JAX build; fall
        # back to default double-buffered resident weights.
        return build(False)(x, w1g, b1g, w2, b2, w3, b3)


# ----------------------------------------------------------------------------- init / reference


def init_params(key, in_channels, hidden_channels, out_channels):
    """Mimics torch.nn.Linear default init U(-1/sqrt(fan_in), +1/sqrt(fan_in)).
    Weights stored transposed to (fan_in, fan_out) so the kernel does x @ W."""
    def linear(k, fan_in, fan_out):
        kw, kb = jax.random.split(k)
        bound = 1.0 / jnp.sqrt(fan_in)
        w = jax.random.uniform(kw, (fan_in, fan_out), jnp.float32, -bound, bound)
        b = jax.random.uniform(kb, (1, fan_out), jnp.float32, -bound, bound)
        return w, b

    k1, k2, k3, k4 = jax.random.split(key, 4)
    w1, b1 = linear(k1, in_channels, out_channels)       # self.mlp[0]
    wg, bg = linear(k2, in_channels, out_channels)       # self.mlp_gate[0]
    w2, b2 = linear(k3, out_channels, hidden_channels)   # self.mlp_final[0]
    w3, b3 = linear(k4, hidden_channels, out_channels)   # self.mlp_final[2]
    return dict(w1=w1, b1=b1, wg=wg, bg=bg, w2=w2, b2=b2, w3=w3, b3=b3)


def _reference(x, p):
    """Pure-JAX f32 reference of GraphAggregator.forward."""
    states = jax.nn.leaky_relu(x @ p["w1"] + p["b1"], 0.01)
    gates = jax.nn.softmax(x @ p["wg"] + p["bg"], axis=1)
    s = states * gates
    h = jax.nn.leaky_relu(s @ p["w2"] + p["b2"], 0.01)
    return h @ p["w3"] + p["b3"]


if __name__ == "__main__":
    in_channels, hidden_channels, out_channels = 16, 32, 16
    n_nodes = 10   # deliberately not a multiple of the row tile: exercises the ragged boundary

    key = jax.random.PRNGKey(0)
    kx, kp = jax.random.split(key)
    x = jax.random.normal(kx, (n_nodes, in_channels), jnp.float32)
    params = init_params(kp, in_channels, hidden_channels, out_channels)
    prepared = prepare_params(params)

    out = jax.block_until_ready(graph_aggregator(x, prepared))
    ref = jax.block_until_ready(_reference(x, params))

    assert out.shape == (n_nodes, out_channels)
    # Tolerance loosened for bf16 matmul operands + approx reciprocal (f32 accumulation kept).
    assert jnp.allclose(out, ref, atol=2e-2, rtol=2e-2), float(jnp.max(jnp.abs(out - ref)))
    print("KERNEL_OK")
</pallas_src>

<mosaic_0001>
module attributes {stable_mosaic.version = 11 : i64} {
  func.func @graph_aggregator_kernel(%arg0: i32, %arg1: memref<8x16xf32, #tpu.memory_space<vmem>>, %arg2: memref<16x256xbf16, #tpu.memory_space<vmem>>, %arg3: memref<1x256xf32, #tpu.memory_space<vmem>>, %arg4: memref<128x32xbf16, #tpu.memory_space<vmem>>, %arg5: memref<1x32xf32, #tpu.memory_space<vmem>>, %arg6: memref<32x16xbf16, #tpu.memory_space<vmem>>, %arg7: memref<1x16xf32, #tpu.memory_space<vmem>>, %arg8: memref<8x16xf32, #tpu.memory_space<vmem>>) attributes {dimension_semantics = [#tpu.dimension_semantics<parallel>], iteration_bounds = array<i64: 2>, scalar_prefetch = 0 : i64, scratch_operands = 0 : i64, tpu.core_type = #tpu.core_type<tc>, window_params = [{transform_indices = @transform_0, window_bounds = array<i64: 8, 16>}, {pipeline_mode = #tpu.pipeline_mode<synchronous>, transform_indices = @transform_1, window_bounds = array<i64: 16, 256>}, {pipeline_mode = #tpu.pipeline_mode<synchronous>, transform_indices = @transform_2, window_bounds = array<i64: 1, 256>}, {pipeline_mode = #tpu.pipeline_mode<synchronous>, transform_indices = @transform_3, window_bounds = array<i64: 128, 32>}, {pipeline_mode = #tpu.pipeline_mode<synchronous>, transform_indices = @transform_4, window_bounds = array<i64: 1, 32>}, {pipeline_mode = #tpu.pipeline_mode<synchronous>, transform_indices = @transform_5, window_bounds = array<i64: 32, 16>}, {pipeline_mode = #tpu.pipeline_mode<synchronous>, transform_indices = @transform_6, window_bounds = array<i64: 1, 16>}, {transform_indices = @transform_7, window_bounds = array<i64: 8, 16>}]} {
    %c0 = arith.constant 0 : index
    %c0_0 = arith.constant 0 : index
    %0 = vector.load %arg1[%c0, %c0_0] : memref<8x16xf32, #tpu.memory_space<vmem>>, vector<8x16xf32>
    %1 = arith.truncf %0 : vector<8x16xf32> to vector<8x16xbf16>
    %c0_1 = arith.constant 0 : index
    %c0_2 = arith.constant 0 : index
    %2 = vector.load %arg2[%c0_1, %c0_2] : memref<16x256xbf16, #tpu.memory_space<vmem>>, vector<16x256xbf16>
    %cst = arith.constant dense<0.000000e+00> : vector<8x256xf32>
    %3 = tpu.matmul %1, %2, %cst {dimension_numbers = #tpu.dot_dimension_numbers<[1], [0], [0], [1], [0, 0, 1, 1], [], []>} : vector<8x16xbf16>, vector<16x256xbf16>, vector<8x256xf32> -> vector<8x256xf32>
    %c0_3 = arith.constant 0 : index
    %c0_4 = arith.constant 0 : index
    %4 = vector.load %arg3[%c0_3, %c0_4] : memref<1x256xf32, #tpu.memory_space<vmem>>, vector<1x256xf32>
    %5 = vector.broadcast %4 : vector<1x256xf32> to vector<8x256xf32>
    %6 = arith.addf %3, %5 : vector<8x256xf32>
    %7 = vector.extract_strided_slice %6 {offsets = [0, 0], sizes = [8, 128], strides = [1, 1]} : vector<8x256xf32> to vector<8x128xf32>
    %cst_5 = arith.constant 0.00999999977 : f32
    %8 = vector.broadcast %cst_5 : f32 to vector<8x128xf32>
    %9 = arith.mulf %8, %7 : vector<8x128xf32>
    %10 = arith.maximumf %7, %9 : vector<8x128xf32>
    %11 = vector.extract_strided_slice %6 {offsets = [0, 128], sizes = [8, 128], strides = [1, 1]} : vector<8x256xf32> to vector<8x128xf32>
    %cst_6 = arith.constant dense<0xFF800000> : vector<8xf32>
    %12 = vector.multi_reduction <maximumf>, %11, %cst_6 [1] : vector<8x128xf32> to vector<8xf32>
    %13 = vector.shape_cast %12 : vector<8xf32> to vector<8x1xf32>
    %14 = vector.broadcast %13 : vector<8x1xf32> to vector<8x128xf32>
    %15 = arith.subf %11, %14 : vector<8x128xf32>
    %16 = math.exp %15 : vector<8x128xf32>
    %cst_7 = arith.constant dense<0.000000e+00> : vector<8xf32>
    %17 = vector.multi_reduction <add>, %16, %cst_7 [1] : vector<8x128xf32> to vector<8xf32>
    %18 = vector.shape_cast %17 : vector<8xf32> to vector<8x1xf32>
    %19 = tpu.reciprocal %18 {approx = true} : vector<8x1xf32> -> vector<8x1xf32>
    %20 = vector.broadcast %19 : vector<8x1xf32> to vector<8x128xf32>
    %21 = arith.mulf %16, %20 : vector<8x128xf32>
    %22 = arith.mulf %10, %21 : vector<8x128xf32>
    %23 = arith.truncf %22 : vector<8x128xf32> to vector<8x128xbf16>
    %c0_8 = arith.constant 0 : index
    %c0_9 = arith.constant 0 : index
    %24 = vector.load %arg4[%c0_8, %c0_9] : memref<128x32xbf16, #tpu.memory_space<vmem>>, vector<128x32xbf16>
    %cst_10 = arith.constant dense<0.000000e+00> : vector<8x32xf32>
    %25 = tpu.matmul %23, %24, %cst_10 {dimension_numbers = #tpu.dot_dimension_numbers<[1], [0], [0], [1], [0, 0, 1, 1], [], []>} : vector<8x128xbf16>, vector<128x32xbf16>, vector<8x32xf32> -> vector<8x32xf32>
    %c0_11 = arith.constant 0 : index
    %c0_12 = arith.constant 0 : index
    %26 = vector.load %arg5[%c0_11, %c0_12] : memref<1x32xf32, #tpu.memory_space<vmem>>, vector<1x32xf32>
    %27 = vector.broadcast %26 : vector<1x32xf32> to vector<8x32xf32>
    %28 = arith.addf %25, %27 : vector<8x32xf32>
    %cst_13 = arith.constant 0.00999999977 : f32
    %29 = vector.broadcast %cst_13 : f32 to vector<8x32xf32>
    %30 = arith.mulf %29, %28 : vector<8x32xf32>
    %31 = arith.maximumf %28, %30 : vector<8x32xf32>
    %32 = arith.truncf %31 : vector<8x32xf32> to vector<8x32xbf16>
    %c0_14 = arith.constant 0 : index
    %c0_15 = arith.constant 0 : index
    %33 = vector.load %arg6[%c0_14, %c0_15] : memref<32x16xbf16, #tpu.memory_space<vmem>>, vector<32x16xbf16>
    %cst_16 = arith.constant dense<0.000000e+00> : vector<8x16xf32>
    %34 = tpu.matmul %32, %33, %cst_16 {dimension_numbers = #tpu.dot_dimension_numbers<[1], [0], [0], [1], [0, 0, 1, 1], [], []>} : vector<8x32xbf16>, vector<32x16xbf16>, vector<8x16xf32> -> vector<8x16xf32>
    %c0_17 = arith.constant 0 : index
    %c0_18 = arith.constant 0 : index
    %35 = vector.load %arg7[%c0_17, %c0_18] : memref<1x16xf32, #tpu.memory_space<vmem>>, vector<1x16xf32>
    %36 = vector.broadcast %35 : vector<1x16xf32> to vector<8x16xf32>
    %37 = arith.addf %34, %36 : vector<8x16xf32>
    %c0_19 = arith.constant 0 : index
    %c0_20 = arith.constant 0 : index
    %38 = vector.load %arg8[%c0_19, %c0_20] : memref<8x16xf32, #tpu.memory_space<vmem>>, vector<8x16xf32>
    tpu.vector_store %arg8[%c0_19, %c0_20], %37 {strides = array<i32>} : memref<8x16xf32, #tpu.memory_space<vmem>>, vector<8x16xf32>,
    return
  }
  func.func @transform_0(%arg0: i32) -> (i32, i32) {
    %c0_i32 = arith.constant 0 : i32
    %c0_i32_0 = arith.constant 0 : i32
    return %arg0, %c0_i32 : i32, i32
  }
  func.func @transform_1(%arg0: i32) -> (i32, i32) {
    %c0_i32 = arith.constant 0 : i32
    %c0_i32_0 = arith.constant 0 : i32
    %c0_i32_1 = arith.constant 0 : i32
    return %c0_i32, %c0_i32_0 : i32, i32
  }
  func.func @transform_2(%arg0: i32) -> (i32, i32) {
    %c0_i32 = arith.constant 0 : i32
    %c0_i32_0 = arith.constant 0 : i32
    %c0_i32_1 = arith.constant 0 : i32
    return %c0_i32, %c0_i32_0 : i32, i32
  }
  func.func @transform_3(%arg0: i32) -> (i32, i32) {
    %c0_i32 = arith.constant 0 : i32
    %c0_i32_0 = arith.constant 0 : i32
    %c0_i32_1 = arith.constant 0 : i32
    return %c0_i32, %c0_i32_0 : i32, i32
  }
  func.func @transform_4(%arg0: i32) -> (i32, i32) {
    %c0_i32 = arith.constant 0 : i32
    %c0_i32_0 = arith.constant 0 : i32
    %c0_i32_1 = arith.constant 0 : i32
    return %c0_i32, %c0_i32_0 : i32, i32
  }
  func.func @transform_5(%arg0: i32) -> (i32, i32) {
    %c0_i32 = arith.constant 0 : i32
    %c0_i32_0 = arith.constant 0 : i32
    %c0_i32_1 = arith.constant 0 : i32
    return %c0_i32, %c0_i32_0 : i32, i32
  }
  func.func @transform_6(%arg0: i32) -> (i32, i32) {
    %c0_i32 = arith.constant 0 : i32
    %c0_i32_0 = arith.constant 0 : i32
    %c0_i32_1 = arith.constant 0 : i32
    return %c0_i32, %c0_i32_0 : i32, i32
  }
  func.func @transform_7(%arg0: i32) -> (i32, i32) {
    %c0_i32 = arith.constant 0 : i32
    %c0_i32_0 = arith.constant 0 : i32
    return %arg0, %c0_i32 : i32, i32
  }
}

module attributes {stable_mosaic.version = 11 : i64} {
  func.func @graph_aggregator_kernel(%arg0: i32, %arg1: memref<8x16xf32, #tpu.memory_space<vmem>>, %arg2: memref<16x256xbf16, #tpu.memory_space<vmem>>, %arg3: memref<1x256xf32, #tpu.memory_space<vmem>>, %arg4: memref<128x32xbf16, #tpu.memory_space<vmem>>, %arg5: memref<1x32xf32, #tpu.memory_space<vmem>>, %arg6: memref<32x16xbf16, #tpu.memory_space<vmem>>, %arg7: memref<1x16xf32, #tpu.memory_space<vmem>>, %arg8: memref<8x16xf32, #tpu.memory_space<vmem>>) attributes {dimension_semantics = [#tpu.dimension_semantics<parallel>], iteration_bounds = array<i64: 2>, scalar_prefetch = 0 : i64, scratch_operands = 0 : i64, tpu.core_type = #tpu.core_type<tc>, window_params = [{transform_indices = @transform_0, window_bounds = array<i64: 8, 16>}, {pipeline_mode = #tpu.pipeline_mode<synchronous>, transform_indices = @transform_1, window_bounds = array<i64: 16, 256>}, {pipeline_mode = #tpu.pipeline_mode<synchronous>, transform_indices = @transform_2, window_bounds = array<i64: 1, 256>}, {pipeline_mode = #tpu.pipeline_mode<synchronous>, transform_indices = @transform_3, window_bounds = array<i64: 128, 32>}, {pipeline_mode = #tpu.pipeline_mode<synchronous>, transform_indices = @transform_4, window_bounds = array<i64: 1, 32>}, {pipeline_mode = #tpu.pipeline_mode<synchronous>, transform_indices = @transform_5, window_bounds = array<i64: 32, 16>}, {pipeline_mode = #tpu.pipeline_mode<synchronous>, transform_indices = @transform_6, window_bounds = array<i64: 1, 16>}, {transform_indices = @transform_7, window_bounds = array<i64: 8, 16>}]} {
    %c0 = arith.constant 0 : index
    %c0_0 = arith.constant 0 : index
    %0 = vector.load %arg1[%c0, %c0_0] : memref<8x16xf32, #tpu.memory_space<vmem>>, vector<8x16xf32>
    %1 = arith.truncf %0 : vector<8x16xf32> to vector<8x16xbf16>
    %c0_1 = arith.constant 0 : index
    %c0_2 = arith.constant 0 : index
    %2 = vector.load %arg2[%c0_1, %c0_2] : memref<16x256xbf16, #tpu.memory_space<vmem>>, vector<16x256xbf16>
    %cst = arith.constant dense<0.000000e+00> : vector<8x256xf32>
    %3 = tpu.matmul %1, %2, %cst {dimension_numbers = #tpu.dot_dimension_numbers<[1], [0], [0], [1], [0, 0, 1, 1], [], []>} : vector<8x16xbf16>, vector<16x256xbf16>, vector<8x256xf32> -> vector<8x256xf32>
    %c0_3 = arith.constant 0 : index
    %c0_4 = arith.constant 0 : index
    %4 = vector.load %arg3[%c0_3, %c0_4] : memref<1x256xf32, #tpu.memory_space<vmem>>, vector<1x256xf32>
    %5 = vector.broadcast %4 : vector<1x256xf32> to vector<8x256xf32>
    %6 = arith.addf %3, %5 : vector<8x256xf32>
    %7 = vector.extract_strided_slice %6 {offsets = [0, 0], sizes = [8, 128], strides = [1, 1]} : vector<8x256xf32> to vector<8x128xf32>
    %cst_5 = arith.constant 0.00999999977 : f32
    %8 = vector.broadcast %cst_5 : f32 to vector<8x128xf32>
    %9 = arith.mulf %8, %7 : vector<8x128xf32>
    %10 = arith.maximumf %7, %9 : vector<8x128xf32>
    %11 = vector.extract_strided_slice %6 {offsets = [0, 128], sizes = [8, 128], strides = [1, 1]} : vector<8x256xf32> to vector<8x128xf32>
    %cst_6 = arith.constant dense<0xFF800000> : vector<8xf32>
    %12 = vector.multi_reduction <maximumf>, %11, %cst_6 [1] : vector<8x128xf32> to vector<8xf32>
    %13 = vector.shape_cast %12 : vector<8xf32> to vector<8x1xf32>
    %14 = vector.broadcast %13 : vector<8x1xf32> to vector<8x128xf32>
    %15 = arith.subf %11, %14 : vector<8x128xf32>
    %16 = math.exp %15 : vector<8x128xf32>
    %cst_7 = arith.constant dense<0.000000e+00> : vector<8xf32>
    %17 = vector.multi_reduction <add>, %16, %cst_7 [1] : vector<8x128xf32> to vector<8xf32>
    %18 = vector.shape_cast %17 : vector<8xf32> to vector<8x1xf32>
    %19 = tpu.reciprocal %18 {approx = true} : vector<8x1xf32> -> vector<8x1xf32>
    %20 = vector.broadcast %19 : vector<8x1xf32> to vector<8x128xf32>
    %21 = arith.mulf %16, %20 : vector<8x128xf32>
    %22 = arith.mulf %10, %21 : vector<8x128xf32>
    %23 = arith.truncf %22 : vector<8x128xf32> to vector<8x128xbf16>
    %c0_8 = arith.constant 0 : index
    %c0_9 = arith.constant 0 : index
    %24 = vector.load %arg4[%c0_8, %c0_9] : memref<128x32xbf16, #tpu.memory_space<vmem>>, vector<128x32xbf16>
    %cst_10 = arith.constant dense<0.000000e+00> : vector<8x32xf32>
    %25 = tpu.matmul %23, %24, %cst_10 {dimension_numbers = #tpu.dot_dimension_numbers<[1], [0], [0], [1], [0, 0, 1, 1], [], []>} : vector<8x128xbf16>, vector<128x32xbf16>, vector<8x32xf32> -> vector<8x32xf32>
    %c0_11 = arith.constant 0 : index
    %c0_12 = arith.constant 0 : index
    %26 = vector.load %arg5[%c0_11, %c0_12] : memref<1x32xf32, #tpu.memory_space<vmem>>, vector<1x32xf32>
    %27 = vector.broadcast %26 : vector<1x32xf32> to vector<8x32xf32>
    %28 = arith.addf %25, %27 : vector<8x32xf32>
    %cst_13 = arith.constant 0.00999999977 : f32
    %29 = vector.broadcast %cst_13 : f32 to vector<8x32xf32>
    %30 = arith.mulf %29, %28 : vector<8x32xf32>
    %31 = arith.maximumf %28, %30 : vector<8x32xf32>
    %32 = arith.truncf %31 : vector<8x32xf32> to vector<8x32xbf16>
    %c0_14 = arith.constant 0 : index
    %c0_15 = arith.constant 0 : index
    %33 = vector.load %arg6[%c0_14, %c0_15] : memref<32x16xbf16, #tpu.memory_space<vmem>>, vector<32x16xbf16>
    %cst_16 = arith.constant dense<0.000000e+00> : vector<8x16xf32>
    %34 = tpu.matmul %32, %33, %cst_16 {dimension_numbers = #tpu.dot_dimension_numbers<[1], [0], [0], [1], [0, 0, 1, 1], [], []>} : vector<8x32xbf16>, vector<32x16xbf16>, vector<8x16xf32> -> vector<8x16xf32>
    %c0_17 = arith.constant 0 : index
    %c0_18 = arith.constant 0 : index
    %35 = vector.load %arg7[%c0_17, %c0_18] : memref<1x16xf32, #tpu.memory_space<vmem>>, vector<1x16xf32>
    %36 = vector.broadcast %35 : vector<1x16xf32> to vector<8x16xf32>
    %37 = arith.addf %34, %36 : vector<8x16xf32>
    %c0_19 = arith.constant 0 : index
    %c0_20 = arith.constant 0 : index
    %38 = vector.load %arg8[%c0_19, %c0_20] : memref<8x16xf32, #tpu.memory_space<vmem>>, vector<8x16xf32>
    tpu.vector_store %arg8[%c0_19, %c0_20], %37 {strides = array<i32>} : memref<8x16xf32, #tpu.memory_space<vmem>>, vector<8x16xf32>,
    return
  }
  func.func @transform_0(%arg0: i32) -> (i32, i32) {
    %c0_i32 = arith.constant 0 : i32
    %c0_i32_0 = arith.constant 0 : i32
    return %arg0, %c0_i32 : i32, i32
  }
  func.func @transform_1(%arg0: i32) -> (i32, i32) {
    %c0_i32 = arith.constant 0 : i32
    %c0_i32_0 = arith.constant 0 : i32
    %c0_i32_1 = arith.constant 0 : i32
    return %c0_i32, %c0_i32_0 : i32, i32
  }
  func.func @transform_2(%arg0: i32) -> (i32, i32) {
    %c0_i32 = arith.constant 0 : i32
    %c0_i32_0 = arith.constant 0 : i32
    %c0_i32_1 = arith.constant 0 : i32
    return %c0_i32, %c0_i32_0 : i32, i32
  }
  func.func @transform_3(%arg0: i32) -> (i32, i32) {
    %c0_i32 = arith.constant 0 : i32
    %c0_i32_0 = arith.constant 0 : i32
    %c0_i32_1 = arith.constant 0 : i32
    return %c0_i32, %c0_i32_0 : i32, i32
  }
  func.func @transform_4(%arg0: i32) -> (i32, i32) {
    %c0_i32 = arith.constant 0 : i32
    %c0_i32_0 = arith.constant 0 : i32
    %c0_i32_1 = arith.constant 0 : i32
    return %c0_i32, %c0_i32_0 : i32, i32
  }
  func.func @transform_5(%arg0: i32) -> (i32, i32) {
    %c0_i32 = arith.constant 0 : i32
    %c0_i32_0 = arith.constant 0 : i32
    %c0_i32_1 = arith.constant 0 : i32
    return %c0_i32, %c0_i32_0 : i32, i32
  }
  func.func @transform_6(%arg0: i32) -> (i32, i32) {
    %c0_i32 = arith.constant 0 : i32
    %c0_i32_0 = arith.constant 0 : i32
    %c0_i32_1 = arith.constant 0 : i32
    return %c0_i32, %c0_i32_0 : i32, i32
  }
  func.func @transform_7(%arg0: i32) -> (i32, i32) {
    %c0_i32 = arith.constant 0 : i32
    %c0_i32_0 = arith.constant 0 : i32
    return %arg0, %c0_i32 : i32, i32
  }
}

</mosaic_0001>

<bundles_post_ra>
// kernel: tpu_custom_call.1
= control target key start
LH: loop header
LB: loop body
LE: loop exit
PB: predicated region body
PF: predicated region fallthrough
CT: control target
= control target key end

     0   :  { %12 = vsyncpa [#allocation3], 0  ;;  %s994_s0 = inlined_call_operand.vmem [shape: f32[10,16], index: 0, kind: input, shape index: {}]   ;;  %s995_s1 = inlined_call_operand.vmem [shape: bf16[16,256], index: 1, kind: input, shape index: {}]   ;;  %s996_s2 = inlined_call_operand.vmem [shape: f32[1,256], index: 2, kind: input, shape index: {}]   ;;  %s997_s3 = inlined_call_operand.vmem [shape: bf16[128,32], index: 3, kind: input, shape index: {}]   ;;  %s998_s4 = inlined_call_operand.vmem [shape: f32[1,32], index: 4, kind: input, shape index: {}]   ;;  %s999_s5 = inlined_call_operand.vmem [shape: bf16[32,16], index: 5, kind: input, shape index: {}]   ;;  %s1000_s6 = inlined_call_operand.vmem [shape: f32[1,16], index: 6, kind: input, shape index: {}]   ;;  %s1001_s7 = inlined_call_operand.hbm [shape: f32[10,16], index: 7, kind: output, shape index: {}]  }
   0x1   :  { %14 = vsyncpa [#allocation3 + $0x1], 0  ;;  %s847_s24 = smov 0   ;;  %s849_s25 = smov 0  }
   0x2   :  { %s851_s26 = smov 0   ;;  %s853_s27 = smov 0  }
   0x3 LB: > { %s868_s28 = sadd.s32 4294967295, %s801_s27   ;;  %s614_s29 = sadd.s32 4294967294, %s801_s27   ;;  %s801_s27 = sphi %s853_s27, %s1007_s27   ;;  %s797_s26 = sphi %s851_s26, %s1006_s26   ;;  %s793_s25 = sphi %s849_s25, %s1005_s25   ;;  %s789_s24 = sphi %s847_s24, %s1004_s24  }
   0x4   : > { %s872_s30 = sadd.s32 1, %s801_s27   ;;  %s179_s8 = sadd.s32 1, %s797_s26 }
   0x5   : > { %s176_s9 = ssub.s32 %s801_s27, %s872_s30  ;;  %p189_p0 = scmp.ne.s32.totalorder %s797_s26, %s793_s25 }
   0x6   : > { %p177_p1 = scmp.eq.s32.totalorder %s176_s9, 0  ;;  %p190_p2 = scmp.eq.s32.totalorder %s868_s28, 1 }
   0x7   : > { %p195_p3 = scmp.ne.s32.totalorder %s793_s25, %s789_s24  ;;  %p196_p4 = scmp.eq.s32.totalorder %s614_s29, 1 }
   0x8   : > { %s883_s10 = scalar_select %p177_p1, %s797_s26, %s179_s8  }
   0x9   : > { %p885_p5 = por %p190_p2, %p189_p0  ;;  %p889_p6 = por %p196_p4, %p195_p3 }
   0xa   : > { %p617_p7 = scmp.ge.s32.totalorder %s801_s27, 1  ;;  %p239_p8 = scmp.lt.s32.totalorder %s801_s27, 3 }
   0xc   : > { %p240_p9 = pnand %p617_p7, %p239_p8 }
   0xd   : > { %v722_v0 = vld [vmem:[%s995_s1 + $0x4] ss:$8 sps:$4 sm:$0xff] (!%p240_p9)   ;;  %p270_p10 = scmp.lt.s32.totalorder (!%p240_p9), %s868_s28, 1  ;;  %v724_v1 = vld [vmem:[%s995_s1] ss:$8 sps:$4 sm:$0xff] (!%p240_p9)   ;;  %v803_v2 = vmov (!%p240_p9), 0   ;;  %v281_v5 = vlaneseq (!%p240_p9) }
   0xe   : > { %243 = sbr.rel (%p240_p9) target bundleno = 1007 (0x3ef), region = 48  ;;  %337 = vmatprep.mubr.bf16.mxu0 (!%p240_p9), %v803_v2  ;;  %305 = vmatprep.subr.bf16.mxu0 (!%p240_p9), %v722_v0  ;;  %vm301_vm0 = vcmask (!%p240_p9), 130048   ;;  %v279_v8 = vld [vmem:[%s996_s2] sm:$0x3] (!%p240_p9)  ;;  %v804_v16 = vmov (!%p240_p9), 0.0   ;;  %v726_v17 = vld [vmem:[%s997_s3 + $0x8] sm:$0xff] (!%p240_p9)  }
   0xf   : > { %306 = vmatpush1.bf16.msra.mxu0 (!%p240_p9), %v724_v1  ;;  %v282_v6 = vshrl.u32 (!%p240_p9), %v281_v5, 7  ;;  %v725_v15 = vld [vmem:[%s997_s3] sm:$0xff] (!%p240_p9)   ;;  %652 = vmatprep.subr.bf16.mxu1 (!%p240_p9), %v804_v16  ;;  %v727_v18 = vld [vmem:[%s997_s3 + $0x10] sm:$0xff] (!%p240_p9)   ;;  %v728_v19 = vld [vmem:[%s997_s3 + $0x18] sm:$0xff] (!%p240_p9)   ;;  %vm805_vm1 = vmmov (!%p240_p9), 0   ;;  %vm496_vm2 = vcmask (!%p240_p9), 261120  }
  0x10   : > { %672 = vmatprep.subr.bf16.mxu0 (!%p240_p9), %v804_v16  ;;  %653 = vmatpush3.bf16.msra.mxu1 (!%p240_p9), %v725_v15  ;;  %v729_v24 = vld [vmem:[%s997_s3 + $0x20] sm:$0xff] (!%p240_p9)   ;;  %v730_v25 = vld [vmem:[%s997_s3 + $0x28] sm:$0xff] (!%p240_p9)   ;;  %v731_v26 = vld [vmem:[%s997_s3 + $0x30] sm:$0xff] (!%p240_p9)   ;;  %s637_s22 = sshll.u32 (!%p240_p9), %s868_s28, 7  ;;  %s806_s15 = smov (!%p240_p9), [#allocation2]  }
  0x11   : > { %v287_v7 = vsub.s32 (!%p240_p9), 1, %v282_v6  ;;  %654 = vmatprep.subr.bf16.mxu1 (!%p240_p9), %v804_v16  ;;  %668 = vmatprep.mubr.msk.bf16.mxu1 (!%p240_p9), %vm805_vm1, %v804_v16  ;;  %v732_v27 = vld [vmem:[%s997_s3 + $0x38] sm:$0xff] (!%p240_p9)   ;;  %v283_v28 = vsub.s32 (!%p240_p9), 0, %v282_v6  ;;  %v733_v38 = vld [vmem:[%s999_s5] sm:$0xff] (!%p240_p9)   ;;  %v734_v39 = vld [vmem:[%s999_s5 + $0x8] sm:$0xff] (!%p240_p9)   ;;  %s951_s13 = scalar_lea.hbm (!%p240_p9), %s1001_s7, %s637_s22  ;;  %s743_s16 = sshll.u32 (!%p240_p9), %s806_s15, 4  ;;  %s744_s16 = int_to_ptr.vmem [resolvable:$false] %s743_s16 }
  0x12   : > { %v623_v40 = vld [vmem:[%s998_s4] ss:$0 sm:$0xff] (!%p240_p9) }
  0x13   : > { %v288_v9 = vrot.slane (!%p240_p9), %v279_v8, %v287_v7  ;;  %v284_v29 = vrot.slane (!%p240_p9), %v279_v8, %v283_v28  ;;  %v632_v49 = vld [vmem:[%s1000_s6] ss:$0 sm:$0xff] (!%p240_p9) }
  0x14   : > { %655 = vmatpush3.bf16.msra.mxu1 (!%p240_p9), %v726_v17 }
  0x15   : > { %s271_s17 = scalar_select %p270_p10, %s868_s28, 1  ;;  %656 = vmatprep.subr.bf16.mxu1 %v804_v16 }
  0x17   : > { %s619_s18 = sshll.u32 %s271_s17, 3  ;;  %s745_s17 = scalar_lea.vmem %s744_s16, 256 }
  0x18   : > { %s273_s21 = scalar_lea.vmem %s994_s0, %s619_s18  ;;  %657 = vmatpush3.bf16.msra.mxu1 %v727_v18  ;;  %s267_s18 = sand.u32 1, %s793_s25  }
  0x19   : > { %v275_v3 = vld [vmem:[%s273_s21] sm:$0xff]  ;;  %658 = vmatprep.subr.bf16.mxu1 %v804_v16  ;;  %s618_s19 = sshll.u32 %s267_s18, 3  ;;  %s542_s28 = scalar_lea.sflag [#allocation3], %s267_s18 }
  0x1a   : > { %v276_v4 = vpack.c.bf16 %v275_v3, %v275_v3  ;;  %s269_s23 = scalar_lea.vmem [#allocation2], %s618_s19 }
  0x1b   : > { %s555_s29 = sshll.u32 %s269_s23, 4  ;;  %s953_s29 = int_to_ptr.vmem [resolvable:$true] %s555_s29 }
  0x1c   : > { %622 = vmatmul.mubr.msk.bf16.vlgmr.msra.gmra.mrb[0].mxu0 %vm301_vm0, %v276_v4  ;;  %659 = vmatpush3.bf16.msra.mxu1 %v728_v19  ;;  %s739_s14 = scalar_lea.vmem %s953_s29, 128  ;;  %p746_p0 = scmp.lt.s32.totalorder %s953_s29, %s744_s16 }
  0x1d   : > { %660 = vmatprep.subr.bf16.mxu1 %v804_v16  ;;  %676 = vmatprep.mubr.msk.bf16.mxu0 %vm805_vm1, %v804_v16  ;;  %p740_p11 = scmp.ne.s32.totalorder %s953_s29, %s739_s14  ;;  %p747_p1 = scmp.lt.s32.totalorder %s745_s17, %s739_s14 }
  0x1e   : > { %673 = vmatpush3.bf16.msra.mxu0 %v733_v38 }
  0x1f   : > { %674 = vmatprep.subr.bf16.mxu0 %v804_v16  ;;  %p741_p12 = pnand %p740_p11, %p885_p5  ;;  %p748_p2 = por %p747_p1, %p746_p0 }
  0x20   : > { %661 = vmatpush3.bf16.msra.mxu1 %v729_v24 }
  0x21   : > { %662 = vmatprep.subr.bf16.mxu1 %v804_v16  ;;  %p742_p13 = pneg %p741_p12 }
  0x22   : > { %675 = vmatpush3.bf16.msra.mxu0 %v734_v39 }
  0x23   : > { %p749_p3 = pnand %p748_p2, %p742_p13 }
  0x24   : > { %663 = vmatpush3.bf16.msra.mxu1 %v730_v25 }
  0x25   : > { %664 = vmatprep.subr.bf16.mxu1 %v804_v16 }
  0x28   : > { %665 = vmatpush3.bf16.msra.mxu1 %v731_v26 }
  0x29   : > { %666 = vmatprep.subr.bf16.mxu1 %v804_v16 }
  0x2c   : > { %667 = vmatpush3.bf16.msra.mxu1 %v732_v27 }
  0xef   : > { %v339_v10 = vpop.f32.mrb[0].mxu0 }
  0xf0   : > { %v341_v11 = vpop.f32.mrb[1].mxu0  ;;  %v340_v31 = vadd.f32 %v339_v10, %v284_v29 }
  0xf1   : > { %v342_v12 = vadd.f32 %v341_v11, %v288_v9  ;;  %v343_v13 = vpop.f32.mrb[2].mxu0 }
  0xf2   : > { %v344_v14 = vpop.f32.mrb[3].mxu0  ;;  %v346_v32 = vmul.f32 0.01, %v340_v31 }
  0xf3   : > { %348 = vmax.xlane.f32.xlu0 %v342_v12 }
  0xf4   : > { %v347_v34 = vmax.f32 %v340_v31, %v346_v32 }
 0x180   : > { %v349_v20 = vpop.xlane.xlu0 %348 }
 0x181   : > { %v350_v21 = vsub.f32 %v342_v12, %v349_v20 }
 0x183   : > { %v351_v22 = vmul.f32 1.442695, %v350_v21 }
 0x185   : > { %735 = vpow2.f32 %v351_v22 }
 0x18f   : > { %v736_v23 = vpop.eup %735 }
 0x190   : > { %353 = vadd.xlane.f32.xlu0 %v736_v23 }
 0x21d   : > { %v354_v30 = vpop.xlane.xlu0 %353 }
 0x21e   : > { %737 = vrcp.f32 %v354_v30 }
 0x228   : > { %v738_v33 = vpop.eup %737 }
 0x229   : > { %v356_v35 = vmul.f32 %v738_v33, %v736_v23 }
 0x22b   : > { %v357_v36 = vmul.f32 %v356_v35, %v347_v34 }
 0x22d   : > { %v358_v37 = vpack.c.bf16 %v357_v36, %v357_v36 }
 0x22f   : > { %669 = vmatmul.mubr.bf16.vlgmr.msra.gmra.mrb[0].mxu1 %v358_v37 }
 0x302   : > { %v464_v41 = vpop.f32.mrb[0].mxu1 }
 0x303   : > { %v465_v42 = vadd.f32 %v623_v40, %v464_v41  ;;  %v670_v43 = vpop.f32.mrb[1].mxu1 }
 0x304   : > { %v467_v44 = vpop.f32.mrb[2].mxu1 }
 0x305   : > { %v470_v45 = vmul.f32 0.01, %v465_v42  ;;  %v671_v46 = vpop.f32.mrb[3].mxu1 }
 0x307   : > { %v471_v47 = vmax.f32 %v465_v42, %v470_v45 }
 0x309   : > { %v472_v48 = vpack.c.bf16 %v471_v47, %v471_v47 }
 0x30b   : > { %677 = vmatmul.mubr.msk.bf16.vlgmr.msra.gmra.mrb[4].mxu0 %vm496_vm2, %v472_v48 }
 0x3de   : > { %v534_v50 = vpop.f32.mrb[4].mxu0 }
 0x3df   : > { %v535_v51 = vadd.f32 %v632_v49, %v534_v50  ;;  %v678_v52 = vpop.f32.mrb[5].mxu0 }
 0x3e0   : > { %v537_v53 = vpop.f32.mrb[6].mxu0 }
 0x3e1   : > { %v679_v54 = vpop.f32.mrb[7].mxu0  ;;  %540 = vst.msk [vmem:[%s269_s23] sm:$0xff] %vm301_vm0, %v535_v51 }
 0x3e2   : > { %752 = shalt.err (!%p749_p3)
}
 0x3e3   : > { %s753_s18 = scalar_lea.hbm %s951_s13, 128  ;;  %s757_s21 = scalar_lea.hbm %s1001_s7, 256 }
 0x3e4   : > { %p754_p4 = scmp.ne.s32.totalorder %s951_s13, %s753_s18  ;;  %p758_p9 = scmp.lt.u32.totalorder %s951_s13, %s1001_s7 }
 0x3e5   : > { %p759_p10 = scmp.lt.u32.totalorder %s757_s21, %s753_s18  ;;  %p761_p12 = scmp.lt.u32.totalorder %s753_s18, %s951_s13 }
 0x3e6   : > { %p755_p7 = pnand %p754_p4, %p885_p5 }
 0x3e7   : > { %p760_p11 = por %p759_p10, %p758_p9 }
 0x3e8   : > { %p756_p8 = pneg %p755_p7 }
 0x3e9   : > { %p762_p13 = por %p761_p12, %p760_p11 }
 0x3eb   : > { %p763_p0 = pnand %p762_p13, %p756_p8 }
 0x3ed   : > { %766 = shalt.err (!%p763_p0)
}
 0x3ee   : > { %680 = dma.vmem_to_hbm [thread:$0]  (%p885_p5), %s953_s29, 128, %s951_s13, %s542_s28  }
 0x3ef PF: > { %p686_p1 = scmp.ge.s32.totalorder %s801_s27, 2  ;;  %s567_s8 = sand.u32 1, %s789_s24  }
 0x3f0   : > { %s568_s9 = scalar_lea.sflag [#allocation3], %s567_s8 }
 0x3f1   : > { %p683_p2 = pnand %p686_p1, %p889_p6 }
 0x3f3   : > { %784 = dma.done.wait (!%p683_p2), %s568_s9, 128  }
 0x3f4   : > { %786 = vsyncadd (!%p683_p2), %s568_s9, 4294967168  ;;  %p17_p3 = scmp.ge.s32.totalorder %s872_s30, 4   ;;  %s1004_s24 = smov %s793_s25 }
 0x3f5   : > { %s1005_s25 = smov %s797_s26  ;;  %s1006_s26 = smov %s883_s10 }
 0x3f6   : > { %s1007_s27 = smov %s872_s30  ;;  %19 = sbr.rel (!%p17_p3) target bundleno = 3 (0x3), region = 83 }
 0x3fd   :  { %573 = vsyncpa [#allocation3], 1 }
 0x3fe   :  { %575 = vsyncpa [#allocation3 + $0x1], 1 }

// kernel: tpu_custom_call.1
= control target key start
LH: loop header
LB: loop body
LE: loop exit
PB: predicated region body
PF: predicated region fallthrough
CT: control target
= control target key end

     0   :  { %12 = vsyncpa [#allocation3], 0  ;;  %s994_s0 = inlined_call_operand.vmem [shape: f32[10,16], index: 0, kind: input, shape index: {}]   ;;  %s995_s1 = inlined_call_operand.vmem [shape: bf16[16,256], index: 1, kind: input, shape index: {}]   ;;  %s996_s2 = inlined_call_operand.vmem [shape: f32[1,256], index: 2, kind: input, shape index: {}]   ;;  %s997_s3 = inlined_call_operand.vmem [shape: bf16[128,32], index: 3, kind: input, shape index: {}]   ;;  %s998_s4 = inlined_call_operand.vmem [shape: f32[1,32], index: 4, kind: input, shape index: {}]   ;;  %s999_s5 = inlined_call_operand.vmem [shape: bf16[32,16], index: 5, kind: input, shape index: {}]   ;;  %s1000_s6 = inlined_call_operand.vmem [shape: f32[1,16], index: 6, kind: input, shape index: {}]   ;;  %s1001_s7 = inlined_call_operand.hbm [shape: f32[10,16], index: 7, kind: output, shape index: {}]  }
   0x1   :  { %14 = vsyncpa [#allocation3 + $0x1], 0  ;;  %s847_s24 = smov 0   ;;  %s849_s25 = smov 0  }
   0x2   :  { %s851_s26 = smov 0   ;;  %s853_s27 = smov 0  }
   0x3 LB: > { %s868_s28 = sadd.s32 4294967295, %s801_s27   ;;  %s614_s29 = sadd.s32 4294967294, %s801_s27   ;;  %s801_s27 = sphi %s853_s27, %s1007_s27   ;;  %s797_s26 = sphi %s851_s26, %s1006_s26   ;;  %s793_s25 = sphi %s849_s25, %s1005_s25   ;;  %s789_s24 = sphi %s847_s24, %s1004_s24  }
   0x4   : > { %s872_s30 = sadd.s32 1, %s801_s27   ;;  %s179_s8 = sadd.s32 1, %s797_s26 }
   0x5   : > { %s176_s9 = ssub.s32 %s801_s27, %s872_s30  ;;  %p189_p0 = scmp.ne.s32.totalorder %s797_s26, %s793_s25 }
   0x6   : > { %p177_p1 = scmp.eq.s32.totalorder %s176_s9, 0  ;;  %p190_p2 = scmp.eq.s32.totalorder %s868_s28, 1 }
   0x7   : > { %p195_p3 = scmp.ne.s32.totalorder %s793_s25, %s789_s24  ;;  %p196_p4 = scmp.eq.s32.totalorder %s614_s29, 1 }
   0x8   : > { %s883_s10 = scalar_select %p177_p1, %s797_s26, %s179_s8  }
   0x9   : > { %p885_p5 = por %p190_p2, %p189_p0  ;;  %p889_p6 = por %p196_p4, %p195_p3 }
   0xa   : > { %p617_p7 = scmp.ge.s32.totalorder %s801_s27, 1  ;;  %p239_p8 = scmp.lt.s32.totalorder %s801_s27, 3 }
   0xc   : > { %p240_p9 = pnand %p617_p7, %p239_p8 }
   0xd   : > { %v722_v0 = vld [vmem:[%s995_s1 + $0x4] ss:$8 sps:$4 sm:$0xff] (!%p240_p9)   ;;  %p270_p10 = scmp.lt.s32.totalorder (!%p240_p9), %s868_s28, 1  ;;  %v724_v1 = vld [vmem:[%s995_s1] ss:$8 sps:$4 sm:$0xff] (!%p240_p9)   ;;  %v803_v2 = vmov (!%p240_p9), 0   ;;  %v281_v5 = vlaneseq (!%p240_p9) }
   0xe   : > { %243 = sbr.rel (%p240_p9) target bundleno = 1007 (0x3ef), region = 48  ;;  %337 = vmatprep.mubr.bf16.mxu0 (!%p240_p9), %v803_v2  ;;  %305 = vmatprep.subr.bf16.mxu0 (!%p240_p9), %v722_v0  ;;  %vm301_vm0 = vcmask (!%p240_p9), 130048   ;;  %v279_v8 = vld [vmem:[%s996_s2] sm:$0x3] (!%p240_p9)  ;;  %v804_v16 = vmov (!%p240_p9), 0.0   ;;  %v726_v17 = vld [vmem:[%s997_s3 + $0x8] sm:$0xff] (!%p240_p9)  }
   0xf   : > { %306 = vmatpush1.bf16.msra.mxu0 (!%p240_p9), %v724_v1  ;;  %v282_v6 = vshrl.u32 (!%p240_p9), %v281_v5, 7  ;;  %v725_v15 = vld [vmem:[%s997_s3] sm:$0xff] (!%p240_p9)   ;;  %652 = vmatprep.subr.bf16.mxu1 (!%p240_p9), %v804_v16  ;;  %v727_v18 = vld [vmem:[%s997_s3 + $0x10] sm:$0xff] (!%p240_p9)   ;;  %v728_v19 = vld [vmem:[%s997_s3 + $0x18] sm:$0xff] (!%p240_p9)   ;;  %vm805_vm1 = vmmov (!%p240_p9), 0   ;;  %vm496_vm2 = vcmask (!%p240_p9), 261120  }
  0x10   : > { %672 = vmatprep.subr.bf16.mxu0 (!%p240_p9), %v804_v16  ;;  %653 = vmatpush3.bf16.msra.mxu1 (!%p240_p9), %v725_v15  ;;  %v729_v24 = vld [vmem:[%s997_s3 + $0x20] sm:$0xff] (!%p240_p9)   ;;  %v730_v25 = vld [vmem:[%s997_s3 + $0x28] sm:$0xff] (!%p240_p9)   ;;  %v731_v26 = vld [vmem:[%s997_s3 + $0x30] sm:$0xff] (!%p240_p9)   ;;  %s637_s22 = sshll.u32 (!%p240_p9), %s868_s28, 7  ;;  %s806_s15 = smov (!%p240_p9), [#allocation2]  }
  0x11   : > { %v287_v7 = vsub.s32 (!%p240_p9), 1, %v282_v6  ;;  %654 = vmatprep.subr.bf16.mxu1 (!%p240_p9), %v804_v16  ;;  %668 = vmatprep.mubr.msk.bf16.mxu1 (!%p240_p9), %vm805_vm1, %v804_v16  ;;  %v732_v27 = vld [vmem:[%s997_s3 + $0x38] sm:$0xff] (!%p240_p9)   ;;  %v283_v28 = vsub.s32 (!%p240_p9), 0, %v282_v6  ;;  %v733_v38 = vld [vmem:[%s999_s5] sm:$0xff] (!%p240_p9)   ;;  %v734_v39 = vld [vmem:[%s999_s5 + $0x8] sm:$0xff] (!%p240_p9)   ;;  %s951_s13 = scalar_lea.hbm (!%p240_p9), %s1001_s7, %s637_s22  ;;  %s743_s16 = sshll.u32 (!%p240_p9), %s806_s15, 4  ;;  %s744_s16 = int_to_ptr.vmem [resolvable:$false] %s743_s16 }
  0x12   : > { %v623_v40 = vld [vmem:[%s998_s4] ss:$0 sm:$0xff] (!%p240_p9) }
  0x13   : > { %v288_v9 = vrot.slane (!%p240_p9), %v279_v8, %v287_v7  ;;  %v284_v29 = vrot.slane (!%p240_p9), %v279_v8, %v283_v28  ;;  %v632_v49 = vld [vmem:[%s1000_s6] ss:$0 sm:$0xff] (!%p240_p9) }
  0x14   : > { %655 = vmatpush3.bf16.msra.mxu1 (!%p240_p9), %v726_v17 }
  0x15   : > { %s271_s17 = scalar_select %p270_p10, %s868_s28, 1  ;;  %656 = vmatprep.subr.bf16.mxu1 %v804_v16 }
  0x17   : > { %s619_s18 = sshll.u32 %s271_s17, 3  ;;  %s745_s17 = scalar_lea.vmem %s744_s16, 256 }
  0x18   : > { %s273_s21 = scalar_lea.vmem %s994_s0, %s619_s18  ;;  %657 = vmatpush3.bf16.msra.mxu1 %v727_v18  ;;  %s267_s18 = sand.u32 1, %s793_s25  }
  0x19   : > { %v275_v3 = vld [vmem:[%s273_s21] sm:$0xff]  ;;  %658 = vmatprep.subr.bf16.mxu1 %v804_v16  ;;  %s618_s19 = sshll.u32 %s267_s18, 3  ;;  %s542_s28 = scalar_lea.sflag [#allocation3], %s267_s18 }
  0x1a   : > { %v276_v4 = vpack.c.bf16 %v275_v3, %v275_v3  ;;  %s269_s23 = scalar_lea.vmem [#allocation2], %s618_s19 }
  0x1b   : > { %s555_s29 = sshll.u32 %s269_s23, 4  ;;  %s953_s29 = int_to_ptr.vmem [resolvable:$true] %s555_s29 }
  0x1c   : > { %622 = vmatmul.mubr.msk.bf16.vlgmr.msra.gmra.mrb[0].mxu0 %vm301_vm0, %v276_v4  ;;  %659 = vmatpush3.bf16.msra.mxu1 %v728_v19  ;;  %s739_s14 = scalar_lea.vmem %s953_s29, 128  ;;  %p746_p0 = scmp.lt.s32.totalorder %s953_s29, %s744_s16 }
  0x1d   : > { %660 = vmatprep.subr.bf16.mxu1 %v804_v16  ;;  %676 = vmatprep.mubr.msk.bf16.mxu0 %vm805_vm1, %v804_v16  ;;  %p740_p11 = scmp.ne.s32.totalorder %s953_s29, %s739_s14  ;;  %p747_p1 = scmp.lt.s32.totalorder %s745_s17, %s739_s14 }
  0x1e   : > { %673 = vmatpush3.bf16.msra.mxu0 %v733_v38 }
  0x1f   : > { %674 = vmatprep.subr.bf16.mxu0 %v804_v16  ;;  %p741_p12 = pnand %p740_p11, %p885_p5  ;;  %p748_p2 = por %p747_p1, %p746_p0 }
  0x20   : > { %661 = vmatpush3.bf16.msra.mxu1 %v729_v24 }
  0x21   : > { %662 = vmatprep.subr.bf16.mxu1 %v804_v16  ;;  %p742_p13 = pneg %p741_p12 }
  0x22   : > { %675 = vmatpush3.bf16.msra.mxu0 %v734_v39 }
  0x23   : > { %p749_p3 = pnand %p748_p2, %p742_p13 }
  0x24   : > { %663 = vmatpush3.bf16.msra.mxu1 %v730_v25 }
  0x25   : > { %664 = vmatprep.subr.bf16.mxu1 %v804_v16 }
  0x28   : > { %665 = vmatpush3.bf16.msra.mxu1 %v731_v26 }
  0x29   : > { %666 = vmatprep.subr.bf16.mxu1 %v804_v16 }
  0x2c   : > { %667 = vmatpush3.bf16.msra.mxu1 %v732_v27 }
  0xef   : > { %v339_v10 = vpop.f32.mrb[0].mxu0 }
  0xf0   : > { %v341_v11 = vpop.f32.mrb[1].mxu0  ;;  %v340_v31 = vadd.f32 %v339_v10, %v284_v29 }
  0xf1   : > { %v342_v12 = vadd.f32 %v341_v11, %v288_v9  ;;  %v343_v13 = vpop.f32.mrb[2].mxu0 }
  0xf2   : > { %v344_v14 = vpop.f32.mrb[3].mxu0  ;;  %v346_v32 = vmul.f32 0.01, %v340_v31 }
  0xf3   : > { %348 = vmax.xlane.f32.xlu0 %v342_v12 }
  0xf4   : > { %v347_v34 = vmax.f32 %v340_v31, %v346_v32 }
 0x180   : > { %v349_v20 = vpop.xlane.xlu0 %348 }
 0x181   : > { %v350_v21 = vsub.f32 %v342_v12, %v349_v20 }
 0x183   : > { %v351_v22 = vmul.f32 1.442695, %v350_v21 }
 0x185   : > { %735 = vpow2.f32 %v351_v22 }
 0x18f   : > { %v736_v23 = vpop.eup %735 }
 0x190   : > { %353 = vadd.xlane.f32.xlu0 %v736_v23 }
 0x21d   : > { %v354_v30 = vpop.xlane.xlu0 %353 }
 0x21e   : > { %737 = vrcp.f32 %v354_v30 }
 0x228   : > { %v738_v33 = vpop.eup %737 }
 0x229   : > { %v356_v35 = vmul.f32 %v738_v33, %v736_v23 }
 0x22b   : > { %v357_v36 = vmul.f32 %v356_v35, %v347_v34 }
 0x22d   : > { %v358_v37 = vpack.c.bf16 %v357_v36, %v357_v36 }
 0x22f   : > { %669 = vmatmul.mubr.bf16.vlgmr.msra.gmra.mrb[0].mxu1 %v358_v37 }
 0x302   : > { %v464_v41 = vpop.f32.mrb[0].mxu1 }
 0x303   : > { %v465_v42 = vadd.f32 %v623_v40, %v464_v41  ;;  %v670_v43 = vpop.f32.mrb[1].mxu1 }
 0x304   : > { %v467_v44 = vpop.f32.mrb[2].mxu1 }
 0x305   : > { %v470_v45 = vmul.f32 0.01, %v465_v42  ;;  %v671_v46 = vpop.f32.mrb[3].mxu1 }
 0x307   : > { %v471_v47 = vmax.f32 %v465_v42, %v470_v45 }
 0x309   : > { %v472_v48 = vpack.c.bf16 %v471_v47, %v471_v47 }
 0x30b   : > { %677 = vmatmul.mubr.msk.bf16.vlgmr.msra.gmra.mrb[4].mxu0 %vm496_vm2, %v472_v48 }
 0x3de   : > { %v534_v50 = vpop.f32.mrb[4].mxu0 }
 0x3df   : > { %v535_v51 = vadd.f32 %v632_v49, %v534_v50  ;;  %v678_v52 = vpop.f32.mrb[5].mxu0 }
 0x3e0   : > { %v537_v53 = vpop.f32.mrb[6].mxu0 }
 0x3e1   : > { %v679_v54 = vpop.f32.mrb[7].mxu0  ;;  %540 = vst.msk [vmem:[%s269_s23] sm:$0xff] %vm301_vm0, %v535_v51 }
 0x3e2   : > { %752 = shalt.err (!%p749_p3)
}
 0x3e3   : > { %s753_s18 = scalar_lea.hbm %s951_s13, 128  ;;  %s757_s21 = scalar_lea.hbm %s1001_s7, 256 }
 0x3e4   : > { %p754_p4 = scmp.ne.s32.totalorder %s951_s13, %s753_s18  ;;  %p758_p9 = scmp.lt.u32.totalorder %s951_s13, %s1001_s7 }
 0x3e5   : > { %p759_p10 = scmp.lt.u32.totalorder %s757_s21, %s753_s18  ;;  %p761_p12 = scmp.lt.u32.totalorder %s753_s18, %s951_s13 }
 0x3e6   : > { %p755_p7 = pnand %p754_p4, %p885_p5 }
 0x3e7   : > { %p760_p11 = por %p759_p10, %p758_p9 }
 0x3e8   : > { %p756_p8 = pneg %p755_p7 }
 0x3e9   : > { %p762_p13 = por %p761_p12, %p760_p11 }
 0x3eb   : > { %p763_p0 = pnand %p762_p13, %p756_p8 }
 0x3ed   : > { %766 = shalt.err (!%p763_p0)
}
 0x3ee   : > { %680 = dma.vmem_to_hbm [thread:$0]  (%p885_p5), %s953_s29, 128, %s951_s13, %s542_s28  }
 0x3ef PF: > { %p686_p1 = scmp.ge.s32.totalorder %s801_s27, 2  ;;  %s567_s8 = sand.u32 1, %s789_s24  }
 0x3f0   : > { %s568_s9 = scalar_lea.sflag [#allocation3], %s567_s8 }
 0x3f1   : > { %p683_p2 = pnand %p686_p1, %p889_p6 }
 0x3f3   : > { %784 = dma.done.wait (!%p683_p2), %s568_s9, 128  }
 0x3f4   : > { %786 = vsyncadd (!%p683_p2), %s568_s9, 4294967168  ;;  %p17_p3 = scmp.ge.s32.totalorder %s872_s30, 4   ;;  %s1004_s24 = smov %s793_s25 }
 0x3f5   : > { %s1005_s25 = smov %s797_s26  ;;  %s1006_s26 = smov %s883_s10 }
 0x3f6   : > { %s1007_s27 = smov %s872_s30  ;;  %19 = sbr.rel (!%p17_p3) target bundleno = 3 (0x3), region = 83 }
 0x3fd   :  { %573 = vsyncpa [#allocation3], 1 }
 0x3fe   :  { %575 = vsyncpa [#allocation3 + $0x1], 1 }

</bundles_post_ra>
